<compile_context>
chip_gen: v7x
topology: tpu7x:2x2x1
jax: 0.10.0
libtpu: 0.0.40
codegen_flags: <defaults>
</compile_context>

<pallas_src>
import math
import functools

import jax
import jax.numpy as jnp
from jax.experimental import pallas as pl
from jax.experimental.pallas import tpu as pltpu


def _gelu_exact(h):
    # PyTorch nn.GELU() default: 0.5 * x * (1 + erf(x / sqrt(2)))
    return 0.5 * h * (1.0 + jax.lax.erf(h * (1.0 / math.sqrt(2.0))))


def ffn_kernel(x_ref, w1_ref, b1_ref, w2_ref, b2_ref, o_ref, acc_ref):
    """One (TM x dim) row-tile of tokens, one (TH) slice of the hidden dim.

    x_ref : (TM, dim)     w1_ref: (dim, TH)   b1_ref: (1, TH)
    w2_ref: (TH, dim)     b2_ref: (1, dim)    o_ref : (TM, dim)
    acc_ref: (TM, dim) f32 scratch, resident across the hidden grid axis.
    """
    h_idx = pl.program_id(1)

    @pl.when(h_idx == 0)
    def _():
        acc_ref[...] = jnp.zeros_like(acc_ref)

    # First linear (partial over hidden): native-dtype operands, f32 accumulate.
    h = jnp.dot(x_ref[...], w1_ref[...], preferred_element_type=jnp.float32)
    h = h + b1_ref[...].astype(jnp.float32)

    # Exact GELU (matches nn.GELU() default).
    h = _gelu_exact(h)

    # Second linear: contract this hidden slice, accumulate into f32 scratch.
    acc_ref[...] += jnp.dot(
        h.astype(w2_ref.dtype), w2_ref[...], preferred_element_type=jnp.float32
    )

    @pl.when(h_idx == pl.num_programs(1) - 1)
    def _():
        # b2 is added exactly once, at finalize.
        o_ref[...] = (acc_ref[...] + b2_ref[...].astype(jnp.float32)).astype(o_ref.dtype)


def _pick_hidden_tile(hidden, th_target):
    """Largest tile <= th_target that is a multiple of 128 and divides hidden."""
    if hidden <= th_target:
        return hidden
    for cand in (th_target, 1024, 512, 256, 128):
        if cand <= th_target and cand % 128 == 0 and hidden % cand == 0:
            return cand
    return hidden  # fallback: keep hidden un-blocked


@functools.partial(jax.jit, static_argnames=("tm", "th"))
def feed_forward(x, w1, b1, w2, b2, *, tm=256, th=512):
    """x: (B, N, dim) -> (B, N, dim). Weights stored as (dim, hidden)/(hidden, dim)."""
    B, N, dim = x.shape
    hidden = w1.shape[1]
    M = B * N
    x2d = x.reshape(M, dim)

    # --- tile the token dim M (pad with zero rows if needed) ---
    if M <= tm:
        TM = M                      # full-extent block: no divisibility constraint
        M_pad = M
    else:
        TM = tm                     # tm is a multiple of 8 (and of 128 by default)
        M_pad = pl.cdiv(M, TM) * TM
        if M_pad != M:
            x2d = jnp.pad(x2d, ((0, M_pad - M), (0, 0)))

    # --- tile the hidden dim (last grid axis, accumulated) ---
    TH = _pick_hidden_tile(hidden, th)

    b1_2d = b1.reshape(1, hidden)
    b2_2d = b2.reshape(1, dim)

    grid = (M_pad // TM, hidden // TH)

    out2d = pl.pallas_call(
        ffn_kernel,
        out_shape=jax.ShapeDtypeStruct((M_pad, dim), x.dtype),
        grid_spec=pltpu.PrefetchScalarGridSpec(
            num_scalar_prefetch=0,
            grid=grid,
            in_specs=[
                pl.BlockSpec((TM, dim), lambda i, h: (i, 0)),      # x row-tile
                pl.BlockSpec((dim, TH), lambda i, h: (0, h)),      # w1 column slab
                pl.BlockSpec((1, TH), lambda i, h: (0, h)),        # b1 slice
                pl.BlockSpec((TH, dim), lambda i, h: (h, 0)),      # w2 row slab
                pl.BlockSpec((1, dim), lambda i, h: (0, 0)),       # b2 (resident)
            ],
            out_specs=pl.BlockSpec((TM, dim), lambda i, h: (i, 0)),
            scratch_shapes=[pltpu.VMEM((TM, dim), jnp.float32)],
        ),
        compiler_params=pltpu.CompilerParams(
            dimension_semantics=("parallel", "arbitrary"),
            vmem_limit_bytes=64 * 1024 * 1024,
        ),
    )(x2d, w1, b1_2d, w2, b2_2d)

    return out2d[:M].reshape(B, N, dim)


def init_params(key, dim, hidden_dim, dtype=jnp.float32):
    """Deterministic init mimicking nn.Linear's kaiming-uniform fan_in bounds."""
    k1, k2, k3, k4 = jax.random.split(key, 4)
    bound1 = 1.0 / math.sqrt(dim)
    bound2 = 1.0 / math.sqrt(hidden_dim)
    # Stored already transposed vs PyTorch (weight.T) so the kernel does x @ W.
    w1 = jax.random.uniform(k1, (dim, hidden_dim), dtype, -bound1, bound1)
    b1 = jax.random.uniform(k2, (hidden_dim,), dtype, -bound1, bound1)
    w2 = jax.random.uniform(k3, (hidden_dim, dim), dtype, -bound2, bound2)
    b2 = jax.random.uniform(k4, (dim,), dtype, -bound2, bound2)
    return w1, b1, w2, b2


def _reference(x, w1, b1, w2, b2):
    B, N, dim = x.shape
    h = x.reshape(-1, dim) @ w1 + b1
    h = 0.5 * h * (1.0 + jax.lax.erf(h / jnp.sqrt(2.0)))
    return (h @ w2 + b2).reshape(B, N, dim)


if __name__ == "__main__":
    # Small, lane-dense demo shapes (dim/hidden multiples of 128).
    B, N, DIM, HIDDEN = 2, 8, 128, 256

    key = jax.random.PRNGKey(0)
    kx, kp = jax.random.split(key)
    x = jax.random.normal(kx, (B, N, DIM), jnp.float32)
    w1, b1, w2, b2 = init_params(kp, DIM, HIDDEN)

    ref = _reference(x, w1, b1, w2, b2)

    # 1) Default tiling (single M tile, single hidden tile at these sizes).
    out = jax.block_until_ready(feed_forward(x, w1, b1, w2, b2))
    assert jnp.allclose(out, ref, atol=1e-5, rtol=1e-5), "mismatch (default tiling)"

    # 2) Force a multi-tile grid (2 M-tiles x 2 hidden-tiles) to exercise the
    #    pipelined accumulator / pl.when init-finalize path.
    out_tiled = jax.block_until_ready(feed_forward(x, w1, b1, w2, b2, tm=8, th=128))
    assert jnp.allclose(out_tiled, ref, atol=1e-5, rtol=1e-5), "mismatch (blocked tiling)"

    print("KERNEL_OK")
</pallas_src>

<mosaic_0001>
module attributes {stable_mosaic.version = 11 : i64} {
  func.func @ffn_kernel(%arg0: i32, %arg1: i32, %arg2: memref<16x128xf32, #tpu.memory_space<vmem>>, %arg3: memref<128x256xf32, #tpu.memory_space<vmem>>, %arg4: memref<1x256xf32, #tpu.memory_space<vmem>>, %arg5: memref<256x128xf32, #tpu.memory_space<vmem>>, %arg6: memref<1x128xf32, #tpu.memory_space<vmem>>, %arg7: memref<16x128xf32, #tpu.memory_space<vmem>>, %arg8: memref<16x128xf32, #tpu.memory_space<vmem>>) attributes {dimension_semantics = [#tpu.dimension_semantics<parallel>, #tpu.dimension_semantics<arbitrary>], iteration_bounds = array<i64: 1, 1>, scalar_prefetch = 0 : i64, scratch_operands = 1 : i64, tpu.core_type = #tpu.core_type<tc>, window_params = [{transform_indices = @transform_0, window_bounds = array<i64: 16, 128>}, {transform_indices = @transform_1, window_bounds = array<i64: 128, 256>}, {transform_indices = @transform_2, window_bounds = array<i64: 1, 256>}, {transform_indices = @transform_3, window_bounds = array<i64: 256, 128>}, {pipeline_mode = #tpu.pipeline_mode<synchronous>, transform_indices = @transform_4, window_bounds = array<i64: 1, 128>}, {transform_indices = @transform_5, window_bounds = array<i64: 16, 128>}]} {
    %c0_i32 = arith.constant 0 : i32
    %0 = arith.cmpi eq, %arg1, %c0_i32 : i32
    %1 = arith.extui %0 : i1 to i32
    %c0_i32_0 = arith.constant 0 : i32
    %2 = arith.cmpi ne, %1, %c0_i32_0 : i32
    scf.if %2 {
      %cst_18 = arith.constant 0.000000e+00 : f32
      %25 = vector.broadcast %cst_18 : f32 to vector<16x128xf32>
      %c0_19 = arith.constant 0 : index
      %c0_20 = arith.constant 0 : index
      %26 = vector.load %arg8[%c0_19, %c0_20] : memref<16x128xf32, #tpu.memory_space<vmem>>, vector<16x128xf32>
      tpu.vector_store %arg8[%c0_19, %c0_20], %25 {strides = array<i32>} : memref<16x128xf32, #tpu.memory_space<vmem>>, vector<16x128xf32>,
    } else {
    }
    %c0 = arith.constant 0 : index
    %c0_1 = arith.constant 0 : index
    %3 = vector.load %arg2[%c0, %c0_1] : memref<16x128xf32, #tpu.memory_space<vmem>>, vector<16x128xf32>
    %c0_2 = arith.constant 0 : index
    %c0_3 = arith.constant 0 : index
    %4 = vector.load %arg3[%c0_2, %c0_3] : memref<128x256xf32, #tpu.memory_space<vmem>>, vector<128x256xf32>
    %cst = arith.constant dense<0.000000e+00> : vector<16x256xf32>
    %5 = tpu.matmul %3, %4, %cst {dimension_numbers = #tpu.dot_dimension_numbers<[1], [0], [0], [1], [0, 0, 1, 1], [], []>} : vector<16x128xf32>, vector<128x256xf32>, vector<16x256xf32> -> vector<16x256xf32>
    %c0_4 = arith.constant 0 : index
    %c0_5 = arith.constant 0 : index
    %6 = vector.load %arg4[%c0_4, %c0_5] : memref<1x256xf32, #tpu.memory_space<vmem>>, vector<1x256xf32>
    %7 = vector.broadcast %6 : vector<1x256xf32> to vector<16x256xf32>
    %8 = arith.addf %5, %7 : vector<16x256xf32>
    %cst_6 = arith.constant 5.000000e-01 : f32
    %9 = vector.broadcast %cst_6 : f32 to vector<16x256xf32>
    %10 = arith.mulf %9, %8 : vector<16x256xf32>
    %cst_7 = arith.constant 0.707106769 : f32
    %11 = vector.broadcast %cst_7 : f32 to vector<16x256xf32>
    %12 = arith.mulf %8, %11 : vector<16x256xf32>
    %13 = math.erf %12 : vector<16x256xf32>
    %cst_8 = arith.constant 1.000000e+00 : f32
    %14 = vector.broadcast %cst_8 : f32 to vector<16x256xf32>
    %15 = arith.addf %14, %13 : vector<16x256xf32>
    %16 = arith.mulf %10, %15 : vector<16x256xf32>
    %c0_9 = arith.constant 0 : index
    %c0_10 = arith.constant 0 : index
    %17 = vector.load %arg8[%c0_9, %c0_10] : memref<16x128xf32, #tpu.memory_space<vmem>>, vector<16x128xf32>
    %c0_11 = arith.constant 0 : index
    %c0_12 = arith.constant 0 : index
    %18 = vector.load %arg5[%c0_11, %c0_12] : memref<256x128xf32, #tpu.memory_space<vmem>>, vector<256x128xf32>
    %cst_13 = arith.constant dense<0.000000e+00> : vector<16x128xf32>
    %19 = tpu.matmul %16, %18, %cst_13 {dimension_numbers = #tpu.dot_dimension_numbers<[1], [0], [0], [1], [0, 0, 1, 1], [], []>} : vector<16x256xf32>, vector<256x128xf32>, vector<16x128xf32> -> vector<16x128xf32>
    %20 = arith.addf %17, %19 : vector<16x128xf32>
    %c0_14 = arith.constant 0 : index
    %c0_15 = arith.constant 0 : index
    %21 = vector.load %arg8[%c0_14, %c0_15] : memref<16x128xf32, #tpu.memory_space<vmem>>, vector<16x128xf32>
    tpu.vector_store %arg8[%c0_14, %c0_15], %20 {strides = array<i32>} : memref<16x128xf32, #tpu.memory_space<vmem>>, vector<16x128xf32>,
    %c0_i32_16 = arith.constant 0 : i32
    %22 = arith.cmpi eq, %arg1, %c0_i32_16 : i32
    %23 = arith.extui %22 : i1 to i32
    %c0_i32_17 = arith.constant 0 : i32
    %24 = arith.cmpi ne, %23, %c0_i32_17 : i32
    scf.if %24 {
      %c0_18 = arith.constant 0 : index
      %c0_19 = arith.constant 0 : index
      %25 = vector.load %arg8[%c0_18, %c0_19] : memref<16x128xf32, #tpu.memory_space<vmem>>, vector<16x128xf32>
      %c0_20 = arith.constant 0 : index
      %c0_21 = arith.constant 0 : index
      %26 = vector.load %arg6[%c0_20, %c0_21] : memref<1x128xf32, #tpu.memory_space<vmem>>, vector<1x128xf32>
      %27 = vector.broadcast %26 : vector<1x128xf32> to vector<16x128xf32>
      %28 = arith.addf %25, %27 : vector<16x128xf32>
      %c0_22 = arith.constant 0 : index
      %c0_23 = arith.constant 0 : index
      %29 = vector.load %arg7[%c0_22, %c0_23] : memref<16x128xf32, #tpu.memory_space<vmem>>, vector<16x128xf32>
      tpu.vector_store %arg7[%c0_22, %c0_23], %28 {strides = array<i32>} : memref<16x128xf32, #tpu.memory_space<vmem>>, vector<16x128xf32>,
    } else {
    }
    return
  }
  func.func @transform_0(%arg0: i32, %arg1: i32) -> (i32, i32) {
    %c0_i32 = arith.constant 0 : i32
    %c0_i32_0 = arith.constant 0 : i32
    return %arg0, %c0_i32 : i32, i32
  }
  func.func @transform_1(%arg0: i32, %arg1: i32) -> (i32, i32) {
    %c0_i32 = arith.constant 0 : i32
    %c0_i32_0 = arith.constant 0 : i32
    return %c0_i32, %arg1 : i32, i32
  }
  func.func @transform_2(%arg0: i32, %arg1: i32) -> (i32, i32) {
    %c0_i32 = arith.constant 0 : i32
    %c0_i32_0 = arith.constant 0 : i32
    return %c0_i32, %arg1 : i32, i32
  }
  func.func @transform_3(%arg0: i32, %arg1: i32) -> (i32, i32) {
    %c0_i32 = arith.constant 0 : i32
    %c0_i32_0 = arith.constant 0 : i32
    return %arg1, %c0_i32 : i32, i32
  }
  func.func @transform_4(%arg0: i32, %arg1: i32) -> (i32, i32) {
    %c0_i32 = arith.constant 0 : i32
    %c0_i32_0 = arith.constant 0 : i32
    %c0_i32_1 = arith.constant 0 : i32
    return %c0_i32, %c0_i32_0 : i32, i32
  }
  func.func @transform_5(%arg0: i32, %arg1: i32) -> (i32, i32) {
    %c0_i32 = arith.constant 0 : i32
    %c0_i32_0 = arith.constant 0 : i32
    return %arg0, %c0_i32 : i32, i32
  }
}

</mosaic_0001>

<bundles_post_ra>
// kernel: feed_forward.1
= control target key start
LH: loop header
LB: loop body
LE: loop exit
PB: predicated region body
PF: predicated region fallthrough
CT: control target
= control target key end

     0   :  { %10 = vsyncpa [#allocation4], 0  ;;  %s768_s0 = inlined_call_operand.hbm [shape: f32[16,128], index: 0, kind: input, shape index: {}]   ;;  %s769_s1 = inlined_call_operand.hbm [shape: f32[128,256], index: 1, kind: input, shape index: {}]   ;;  %s770_s2 = inlined_call_operand.hbm [shape: f32[1,256], index: 2, kind: input, shape index: {}]   ;;  %s771_s3 = inlined_call_operand.hbm [shape: f32[256,128], index: 3, kind: input, shape index: {}]   ;;  %s772_s4 = inlined_call_operand.hbm [shape: f32[1,128], index: 4, kind: input, shape index: {}]   ;;  %s773_s5 = inlined_call_operand.hbm [shape: f32[16,128], index: 5, kind: output, shape index: {}]  }
   0x1   :  { %11 = vsyncpa [#allocation7], 0 }
   0x2   :  { %12 = vsyncpa [#allocation10], 0 }
   0x3   :  { %13 = vsyncpa [#allocation5], 0  ;;  %s644_s18 = smov [#allocation6]   ;;  %s504_s22 = scalar_lea.hbm %s769_s1, 4096 }
   0x4   :  { %s31_s19 = sshll.u32 %s644_s18, 4  ;;  %p505_p0 = scmp.ne.s32.totalorder %s769_s1, %s504_s22  ;;  %s32_s19 = int_to_ptr.vmem [resolvable:$true] %s31_s19 }
   0x5   :  { %p508_p1 = scmp.lt.u32.totalorder %s504_s22, %s769_s1 }
   0x7   :  { %p510_p2 = pnand %p508_p1, %p505_p0 }
   0x9   :  { %513 = shalt.err (!%p510_p2)
}
   0xa   :  { %s514_s27 = scalar_lea.vmem %s32_s19, 4096  ;;  %p519_p4 = scmp.lt.s32.totalorder %s32_s19, %s32_s19 }
   0xb   :  { %p515_p3 = scmp.ne.s32.totalorder %s32_s19, %s514_s27  ;;  %p520_p5 = scmp.lt.s32.totalorder %s514_s27, %s514_s27 }
   0xd   :  { %p521_p6 = por %p520_p5, %p519_p4 }
   0xf   :  { %p522_p7 = pnand %p521_p6, %p515_p3 }
  0x11   :  { %525 = shalt.err (!%p522_p7)
}
  0x12   :  { %s645_s28 = smov 256   ;;  %s646_s29 = smov 16  }
  0x13   :  { %37 = dma.hbm_to_vmem [thread:$0]  %s769_s1, 4096, %s32_s19, [#allocation7], %s645_s28, %s645_s28, %s646_s29  }
  0x14   :  { %s647_s7 = smov [#allocation9]   ;;  %s648_s9 = smov [#allocation3]  }
  0x15   :  { %s53_s8 = sshll.u32 %s647_s7, 4  ;;  %s19_s10 = sshll.u32 %s648_s9, 4  ;;  %s54_s8 = int_to_ptr.vmem [resolvable:$true] %s53_s8  ;;  %s20_s10 = int_to_ptr.vmem [resolvable:$true] %s19_s10 }
  0x16   :  { %s526_s13 = scalar_lea.hbm %s771_s3, 4096 }
  0x17   :  { %p527_p8 = scmp.ne.s32.totalorder %s771_s3, %s526_s13  ;;  %p530_p9 = scmp.lt.u32.totalorder %s526_s13, %s771_s3 }
  0x19   :  { %p532_p10 = pnand %p530_p9, %p527_p8 }
  0x1b   :  { %535 = shalt.err (!%p532_p10)
}
  0x1c   :  { %s536_s1 = scalar_lea.vmem %s54_s8, 4096  ;;  %p541_p12 = scmp.lt.s32.totalorder %s54_s8, %s54_s8 }
  0x1d   :  { %p537_p11 = scmp.ne.s32.totalorder %s54_s8, %s536_s1  ;;  %p542_p13 = scmp.lt.s32.totalorder %s536_s1, %s536_s1 }
  0x1f   :  { %p543_p0 = por %p542_p13, %p541_p12 }
  0x21   :  { %p544_p1 = pnand %p543_p0, %p537_p11 }
  0x23   :  { %547 = shalt.err (!%p544_p1)
}
  0x24   :  { %s649_s18 = smov 128   ;;  %s650_s19 = smov 8  }
  0x25   :  { %59 = dma.hbm_to_vmem [thread:$0]  %s771_s3, 4096, %s54_s8, [#allocation10], %s649_s18, %s649_s18, %s650_s19  }
  0x26   :  { %s548_s24 = scalar_lea.hbm %s768_s0, 256 }
  0x27   :  { %p549_p2 = scmp.ne.s32.totalorder %s768_s0, %s548_s24  ;;  %p552_p3 = scmp.lt.u32.totalorder %s548_s24, %s768_s0 }
  0x29   :  { %p554_p4 = pnand %p552_p3, %p549_p2 }
  0x2b   :  { %557 = shalt.err (!%p554_p4)
}
  0x2c   :  { %s558_s29 = scalar_lea.vmem %s20_s10, 256  ;;  %p563_p6 = scmp.lt.s32.totalorder %s20_s10, %s20_s10 }
  0x2d   :  { %p559_p5 = scmp.ne.s32.totalorder %s20_s10, %s558_s29  ;;  %p564_p7 = scmp.lt.s32.totalorder %s558_s29, %s558_s29 }
  0x2f   :  { %p565_p8 = por %p564_p7, %p563_p6 }
  0x31   :  { %p566_p9 = pnand %p565_p8, %p559_p5 }
  0x33   :  { %569 = shalt.err (!%p566_p9)
}
  0x34   :  { %25 = dma.hbm_to_vmem [thread:$0]  %s768_s0, 256, %s20_s10, [#allocation4], %s649_s18, %s649_s18, %s650_s19  }
  0x35   :  { %s651_s6 = smov [#allocation8]   ;;  %s652_s8 = smov [#allocation11]  }
  0x36   :  { %s44_s7 = sshll.u32 %s651_s6, 4  ;;  %s66_s9 = sshll.u32 %s652_s8, 4  ;;  %s45_s7 = int_to_ptr.vmem [resolvable:$true] %s44_s7  ;;  %s67_s9 = int_to_ptr.vmem [resolvable:$true] %s66_s9 }
  0x37   :  { %s570_s13 = scalar_lea.hbm %s770_s2, 32 }
  0x38   :  { %p571_p10 = scmp.ne.s32.totalorder %s770_s2, %s570_s13  ;;  %p574_p11 = scmp.lt.u32.totalorder %s570_s13, %s770_s2 }
  0x3a   :  { %p576_p12 = pnand %p574_p11, %p571_p10 }
  0x3c   :  { %579 = shalt.err (!%p576_p12)
}
  0x3d   :  { %s580_s0 = scalar_lea.vmem %s45_s7, 32  ;;  %p585_p0 = scmp.lt.s32.totalorder %s45_s7, %s45_s7 }
  0x3e   :  { %p581_p13 = scmp.ne.s32.totalorder %s45_s7, %s580_s0  ;;  %p586_p1 = scmp.lt.s32.totalorder %s580_s0, %s580_s0 }
  0x40   :  { %p587_p2 = por %p586_p1, %p585_p0 }
  0x42   :  { %p588_p3 = pnand %p587_p2, %p581_p13 }
  0x44   :  { %591 = shalt.err (!%p588_p3)
}
  0x45   :  { %47 = dma.hbm_to_vmem [thread:$0]  %s770_s2, 32, %s45_s7, [#allocation7]  }
  0x46   :  { %s592_s22 = scalar_lea.hbm %s772_s4, 16 }
  0x47   :  { %p593_p4 = scmp.ne.s32.totalorder %s772_s4, %s592_s22  ;;  %p596_p5 = scmp.lt.u32.totalorder %s592_s22, %s772_s4 }
  0x49   :  { %p598_p6 = pnand %p596_p5, %p593_p4 }
  0x4b   :  { %601 = shalt.err (!%p598_p6)
}
  0x4c   :  { %s602_s27 = scalar_lea.vmem %s67_s9, 16  ;;  %s606_s28 = scalar_lea.vmem %s67_s9, 32 }
  0x4d   :  { %p603_p7 = scmp.ne.s32.totalorder %s67_s9, %s602_s27  ;;  %p607_p8 = scmp.lt.s32.totalorder %s67_s9, %s67_s9 }
  0x4e   :  { %p608_p9 = scmp.lt.s32.totalorder %s606_s28, %s602_s27 }
  0x50   :  { %p609_p10 = por %p608_p9, %p607_p8 }
  0x52   :  { %p610_p11 = pnand %p609_p10, %p603_p7 }
  0x54   :  { %613 = shalt.err (!%p610_p11)
}
  0x55   :  { %69 = dma.hbm_to_vmem [thread:$0]  %s772_s4, 16, %s67_s9, [#allocation10]  }
  0x56   :  { %636 = dma.done.wait [#allocation4], 256  }
  0x57   :  { %637 = vsyncadd [#allocation4], 4294967040 }
  0x58   :  { %638 = dma.done.wait [#allocation7], 4128  }
  0x59   :  { %639 = vsyncadd [#allocation7], 4294963168 }
  0x5a   :  { %640 = dma.done.wait [#allocation10], 4112  }
  0x5b   :  { %641 = vsyncadd [#allocation10], 4294963184  ;;  %v653_v0 = vmov 0.0   ;;  %v94_v1 = vld [vmem:[#allocation6 + $0x8] sm:$0xff]  ;;  %v96_v2 = vld [vmem:[#allocation6 + $0x18] sm:$0xff]  ;;  %s654_s4 = smov [#allocation12]  }
  0x5c   :  { %201 = vmatprep.mubr.f32.mxu0 %v653_v0  ;;  %v93_v3 = vld [vmem:[#allocation6] sm:$0xff]  ;;  %v421_v4 = vpack.c.bf16 %v96_v2, %v94_v1  ;;  %v95_v5 = vld [vmem:[#allocation6 + $0x10] sm:$0xff]  ;;  %v98_v6 = vld [vmem:[#allocation6 + $0x28] sm:$0xff]  ;;  %s368_s3 = sshll.u32 %s654_s4, 4  ;;  %s369_s3 = int_to_ptr.vmem [resolvable:$true] %s368_s3 }
  0x5d   :  { %v100_v7 = vld [vmem:[#allocation6 + $0x38] sm:$0xff]  ;;  %v423_v8 = vpack.c.bf16 %v95_v5, %v93_v3  ;;  %v97_v10 = vld [vmem:[#allocation6 + $0x20] sm:$0xff]  ;;  %v99_v11 = vld [vmem:[#allocation6 + $0x30] sm:$0xff]  ;;  %s614_s30 = scalar_lea.vmem %s369_s3, 256  ;;  %p619_p13 = scmp.lt.s32.totalorder %s369_s3, %s369_s3 }
  0x5e   :  { %v425_v9 = vpack.c.bf16 %v100_v7, %v98_v6  ;;  %v102_v12 = vld [vmem:[#allocation6 + $0x48] sm:$0xff]  ;;  %422 = vmatprep.subr.bf16.mxu0 %v421_v4  ;;  %v104_v13 = vld [vmem:[#allocation6 + $0x58] sm:$0xff]  ;;  %v427_v14 = vpack.c.bf16 %v99_v11, %v97_v10  ;;  %v101_v16 = vld [vmem:[#allocation6 + $0x40] sm:$0xff]  ;;  %p615_p12 = scmp.ne.s32.totalorder %s369_s3, %s614_s30  ;;  %p620_p0 = scmp.lt.s32.totalorder %s614_s30, %s614_s30 }
  0x5f   :  { %424 = vmatpush1.bf16.msra.mxu0 %v423_v8  ;;  %v429_v15 = vpack.c.bf16 %v104_v13, %v102_v12  ;;  %v103_v17 = vld [vmem:[#allocation6 + $0x50] sm:$0xff]  ;;  %v106_v18 = vld [vmem:[#allocation6 + $0x68] sm:$0xff]  ;;  %v108_v19 = vld [vmem:[#allocation6 + $0x78] sm:$0xff] }
  0x60   :  { %426 = vmatprep.subr.bf16.mxu0 %v425_v9  ;;  %v431_v20 = vpack.c.bf16 %v103_v17, %v101_v16  ;;  %v433_v21 = vpack.c.bf16 %v108_v19, %v106_v18  ;;  %v105_v22 = vld [vmem:[#allocation6 + $0x60] sm:$0xff]  ;;  %v107_v23 = vld [vmem:[#allocation6 + $0x70] sm:$0xff]  ;;  %v110_v24 = vld [vmem:[#allocation6 + $0x88] sm:$0xff]  ;;  %p621_p1 = por %p620_p0, %p619_p13 }
  0x61   :  { %v112_v25 = vld [vmem:[#allocation6 + $0x98] sm:$0xff]  ;;  %v109_v26 = vld [vmem:[#allocation6 + $0x80] sm:$0xff]  ;;  %v111_v27 = vld [vmem:[#allocation6 + $0x90] sm:$0xff]  ;;  %v435_v30 = vpack.c.bf16 %v107_v23, %v105_v22 }
  0x62   :  { %v252_v28 = vld [vmem:[#allocation9 + $0x80] sm:$0xff]  ;;  %v253_v29 = vld [vmem:[#allocation9 + $0x88] sm:$0xff]  ;;  %v254_v35 = vld [vmem:[#allocation9 + $0x90] sm:$0xff]  ;;  %v437_v36 = vpack.c.bf16 %v112_v25, %v110_v24  ;;  %v439_v46 = vpack.c.bf16 %v111_v27, %v109_v26  ;;  %p622_p2 = pnand %p621_p1, %p615_p12 }
  0x63   :  { %428 = vmatpush1.bf16.msra.mxu0 %v427_v14  ;;  %v114_v31 = vld [vmem:[#allocation6 + $0xa8] sm:$0xff]  ;;  %v453_v32 = vpack.c.bf16 %v253_v29, %v252_v28  ;;  %v255_v38 = vld [vmem:[#allocation9 + $0x98] sm:$0xff]  ;;  %v238_v39 = vld [vmem:[#allocation9 + $0x10] sm:$0xff] }
  0x64   :  { %430 = vmatprep.subr.bf16.mxu0 %v429_v15  ;;  %v236_v33 = vld [vmem:[#allocation9] sm:$0xff]  ;;  %v237_v34 = vld [vmem:[#allocation9 + $0x8] sm:$0xff]  ;;  %v239_v40 = vld [vmem:[#allocation9 + $0x18] sm:$0xff]  ;;  %v457_v42 = vpack.c.bf16 %v255_v38, %v254_v35  ;;  %v127_v35 = vlaneseq }
  0x65   :  { %v455_v37 = vpack.c.bf16 %v237_v34, %v236_v33  ;;  %v116_v41 = vld [vmem:[#allocation6 + $0xb8] sm:$0xff]  ;;  %454 = vmatprep.subr.bf16.mxu1 %v453_v32  ;;  %v256_v43 = vld [vmem:[#allocation9 + $0xa0] sm:$0xff]  ;;  %v257_v44 = vld [vmem:[#allocation9 + $0xa8] sm:$0xff]  ;;  %v459_v45 = vpack.c.bf16 %v239_v40, %v238_v39 }
  0x66   :  { %v461_v47 = vpack.c.bf16 %v257_v44, %v256_v43  ;;  %v240_v48 = vld [vmem:[#allocation9 + $0x20] sm:$0xff]  ;;  %v241_v49 = vld [vmem:[#allocation9 + $0x28] sm:$0xff]  ;;  %v441_v50 = vpack.c.bf16 %v116_v41, %v114_v31  ;;  %v120_v54 = vld [vmem:[#allocation6 + $0xd8] sm:$0xff] }
  0x67   :  { %432 = vmatpush1.bf16.msra.mxu0 %v431_v20  ;;  %456 = vmatpush3.bf16.msra.mxu1 %v455_v37  ;;  %v113_v51 = vld [vmem:[#allocation6 + $0xa0] sm:$0xff]  ;;  %v115_v52 = vld [vmem:[#allocation6 + $0xb0] sm:$0xff]  ;;  %v118_v53 = vld [vmem:[#allocation6 + $0xc8] sm:$0xff]  ;;  %v463_v55 = vpack.c.bf16 %v241_v49, %v240_v48 }
  0x68   :  { %434 = vmatprep.subr.bf16.mxu0 %v433_v21  ;;  %458 = vmatprep.subr.bf16.mxu1 %v457_v42  ;;  %v443_v56 = vpack.c.bf16 %v115_v52, %v113_v51  ;;  %v445_v57 = vpack.c.bf16 %v120_v54, %v118_v53  ;;  %v117_v58 = vld [vmem:[#allocation6 + $0xc0] sm:$0xff]  ;;  %v119_v59 = vld [vmem:[#allocation6 + $0xd0] sm:$0xff]  ;;  %v122_v60 = vld [vmem:[#allocation6 + $0xe8] sm:$0xff] }
  0x69   :  { %v124_v61 = vld [vmem:[#allocation6 + $0xf8] sm:$0xff]  ;;  %v447_v62 = vpack.c.bf16 %v119_v59, %v117_v58  ;;  %v121_v1 = vld [vmem:[#allocation6 + $0xe0] sm:$0xff]  ;;  %v123_v2 = vld [vmem:[#allocation6 + $0xf0] sm:$0xff] }
  0x6a   :  { %v449_v63 = vpack.c.bf16 %v124_v61, %v122_v60  ;;  %v451_v3 = vpack.c.bf16 %v123_v2, %v121_v1  ;;  %v91_v4 = vld [vmem:[#allocation3] sm:$0xff]  ;;  %v92_v5 = vld [vmem:[#allocation3 + $0x8] sm:$0xff]  ;;  %v260_v12 = vld [vmem:[#allocation9 + $0xc0] sm:$0xff] }
  0x6b   :  { %436 = vmatpush1.bf16.msra.mxu0 %v435_v30  ;;  %460 = vmatpush3.bf16.msra.mxu1 %v459_v45  ;;  %v258_v6 = vld [vmem:[#allocation9 + $0xb0] sm:$0xff]  ;;  %v259_v7 = vld [vmem:[#allocation9 + $0xb8] sm:$0xff]  ;;  %v261_v13 = vld [vmem:[#allocation9 + $0xc8] sm:$0xff] }
  0x6c   :  { %438 = vmatprep.subr.bf16.mxu0 %v437_v36  ;;  %462 = vmatprep.subr.bf16.mxu1 %v461_v47  ;;  %v465_v8 = vpack.c.bf16 %v259_v7, %v258_v6  ;;  %v242_v9 = vld [vmem:[#allocation9 + $0x30] sm:$0xff]  ;;  %v243_v10 = vld [vmem:[#allocation9 + $0x38] sm:$0xff]  ;;  %v469_v14 = vpack.c.bf16 %v261_v13, %v260_v12  ;;  %v244_v15 = vld [vmem:[#allocation9 + $0x40] sm:$0xff]  ;;  %v128_v36 = vshrl.u32 %v127_v35, 7 }
  0x6d   :  { %v467_v11 = vpack.c.bf16 %v243_v10, %v242_v9  ;;  %v245_v16 = vld [vmem:[#allocation9 + $0x48] sm:$0xff]  ;;  %v262_v18 = vld [vmem:[#allocation9 + $0xd0] sm:$0xff]  ;;  %v247_v21 = vld [vmem:[#allocation9 + $0x58] sm:$0xff] }
  0x6e   :  { %v471_v17 = vpack.c.bf16 %v245_v16, %v244_v15  ;;  %v246_v20 = vld [vmem:[#allocation9 + $0x50] sm:$0xff]  ;;  %v264_v23 = vld [vmem:[#allocation9 + $0xe0] sm:$0xff]  ;;  %v265_v24 = vld [vmem:[#allocation9 + $0xe8] sm:$0xff]  ;;  %v129_v37 = vsub.s32 0, %v128_v36  ;;  %v133_v39 = vsub.s32 1, %v128_v36 }
  0x6f   :  { %440 = vmatpush1.bf16.msra.mxu0 %v439_v46  ;;  %464 = vmatpush3.bf16.msra.mxu1 %v463_v55  ;;  %v475_v22 = vpack.c.bf16 %v247_v21, %v246_v20  ;;  %v477_v25 = vpack.c.bf16 %v265_v24, %v264_v23  ;;  %v248_v26 = vld [vmem:[#allocation9 + $0x60] sm:$0xff]  ;;  %v249_v27 = vld [vmem:[#allocation9 + $0x68] sm:$0xff]  ;;  %v266_v29 = vld [vmem:[#allocation9 + $0xf0] sm:$0xff] }
  0x70   :  { %442 = vmatprep.subr.bf16.mxu0 %v441_v50  ;;  %466 = vmatprep.subr.bf16.mxu1 %v465_v8  ;;  %v479_v28 = vpack.c.bf16 %v249_v27, %v248_v26  ;;  %v267_v30 = vld [vmem:[#allocation9 + $0xf8] sm:$0xff]  ;;  %v250_v32 = vld [vmem:[#allocation9 + $0x70] sm:$0xff]  ;;  %v382_v9 = vld [vmem:[#allocation11] ss:$0 sm:$0xff] }
  0x71   :  { %v481_v31 = vpack.c.bf16 %v267_v30, %v266_v29  ;;  %v251_v33 = vld [vmem:[#allocation9 + $0x78] sm:$0xff] }
  0x72   :  { %v483_v34 = vpack.c.bf16 %v251_v33, %v250_v32  ;;  %v125_v38 = vld [vmem:[#allocation8] sm:$0x3] }
  0x73   :  { %444 = vmatpush1.bf16.msra.mxu0 %v443_v56  ;;  %468 = vmatpush3.bf16.msra.mxu1 %v467_v11  ;;  %v130_v40 = vrot.slane %v125_v38, %v129_v37  ;;  %v134_v41 = vrot.slane %v125_v38, %v133_v39 }
  0x74   :  { %446 = vmatprep.subr.bf16.mxu0 %v445_v57  ;;  %470 = vmatprep.subr.bf16.mxu1 %v469_v14 }
  0x77   :  { %448 = vmatpush1.bf16.msra.mxu0 %v447_v62  ;;  %472 = vmatpush3.bf16.msra.mxu1 %v471_v17 }
  0x78   :  { %450 = vmatprep.subr.bf16.mxu0 %v449_v63 }
  0x7b   :  { %452 = vmatpush1.bf16.msra.mxu0 %v451_v3 }
  0x7e   :  { %202 = vmatmul.mubr.f32.vlgmr.msra.gmra.mrb[0].mxu0 %v91_v4 }
  0x7f   :  { %207 = vmatprep.mubr.f32.mxu0 %v653_v0  ;;  %v263_v0 = vld [vmem:[#allocation9 + $0xd8] sm:$0xff] }
  0x80   :  { %v473_v19 = vpack.c.bf16 %v263_v0, %v262_v18 }
  0x82   :  { %208 = vmatmul.mubr.f32.gmra.mrb[2].mxu0 %v92_v5  ;;  %474 = vmatprep.subr.bf16.mxu1 %v473_v19 }
  0x83   :  { %476 = vmatpush3.bf16.msra.mxu1 %v475_v22 }
  0x84   :  { %478 = vmatprep.subr.bf16.mxu1 %v477_v25 }
  0x87   :  { %480 = vmatpush3.bf16.msra.mxu1 %v479_v28 }
  0x88   :  { %482 = vmatprep.subr.bf16.mxu1 %v481_v31 }
  0x8b   :  { %484 = vmatpush3.bf16.msra.mxu1 %v483_v34 }
 0x151   :  { %v203_v42 = vpop.f32.mrb[0].mxu0 }
 0x152   :  { %v204_v43 = vadd.f32 %v203_v42, %v130_v40  ;;  %v205_v44 = vpop.f32.mrb[1].mxu0 }
 0x153   :  { %v206_v45 = vadd.f32 %v205_v44, %v134_v41 }
 0x154   :  { %v218_v46 = vmul.f32 0.70710677, %v204_v43  ;;  %v214_v59 = vmul.f32 0.5, %v204_v43 }
 0x155   :  { %v219_v47 = vmul.f32 0.70710677, %v206_v45  ;;  %v209_v48 = vpop.f32.mrb[2].mxu0  ;;  %v215_v57 = vmul.f32 0.5, %v206_v45 }
 0x156   :  { %496 = verf.f32 %v218_v46  ;;  %v210_v49 = vadd.f32 %v209_v48, %v130_v40  ;;  %v211_v50 = vpop.f32.mrb[3].mxu0 }
 0x157   :  { %498 = verf.f32 %v219_v47  ;;  %v212_v51 = vadd.f32 %v211_v50, %v134_v41 }
 0x158   :  { %v220_v52 = vmul.f32 0.70710677, %v210_v49  ;;  %v216_v4 = vmul.f32 0.5, %v210_v49 }
 0x159   :  { %v221_v53 = vmul.f32 0.70710677, %v212_v51  ;;  %v217_v2 = vmul.f32 0.5, %v212_v51 }
 0x15a   :  { %500 = verf.f32 %v220_v52 }
 0x15b   :  { %502 = verf.f32 %v221_v53 }
 0x160   :  { %v497_v54 = vpop.eup %496 }
 0x161   :  { %v499_v55 = vpop.eup %498  ;;  %v226_v56 = vadd.f32 1.0, %v497_v54 }
 0x162   :  { %v227_v58 = vadd.f32 1.0, %v499_v55 }
 0x163   :  { %v230_v1 = vmul.f32 %v226_v56, %v214_v59 }
 0x164   :  { %v501_v60 = vpop.eup %500  ;;  %v231_v61 = vmul.f32 %v227_v58, %v215_v57 }
 0x165   :  { %v503_v62 = vpop.eup %502  ;;  %v228_v63 = vadd.f32 1.0, %v501_v60 }
 0x166   :  { %v229_v3 = vadd.f32 1.0, %v503_v62  ;;  %332 = vmatprep.mubr.f32.mxu1 %v231_v61 }
 0x167   :  { %333 = vmatmul.mubr.f32.vlgmr.msra.gmra.mrb[0].mxu1 %v230_v1  ;;  %v232_v6 = vmul.f32 %v228_v63, %v216_v4 }
 0x168   :  { %v233_v5 = vmul.f32 %v229_v3, %v217_v2 }
 0x16a   :  { %337 = vmatprep.mubr.f32.mxu1 %v233_v5 }
 0x16b   :  { %338 = vmatmul.mubr.f32.gmra.mrb[2].mxu1 %v232_v6 }
 0x23a   :  { %v415_v7 = vpop.f32.mrb[0].mxu1 }
 0x23b   :  { %v416_v8 = vpop.f32.mrb[1].mxu1 }
 0x23c   :  { %v417_v10 = vadd.f32 %v416_v8, %v415_v7 }
 0x23e   :  { %v359_v11 = vadd.f32 %v417_v10, %v382_v9  ;;  %v418_v12 = vpop.f32.mrb[2].mxu1 }
 0x23f   :  { %v419_v13 = vpop.f32.mrb[3].mxu1 }
 0x240   :  { %361 = vst [vmem:[#allocation12] sm:$0xff] %v359_v11  ;;  %v420_v14 = vadd.f32 %v419_v13, %v418_v12 }
 0x242   :  { %v360_v15 = vadd.f32 %v420_v14, %v382_v9 }
 0x244   :  { %362 = vst [vmem:[#allocation12 + $0x8] sm:$0xff] %v360_v15 }
 0x245   :  { %625 = shalt.err (!%p622_p2)
}
 0x246   :  { %s626_s8 = scalar_lea.hbm %s773_s5, 256 }
 0x247   :  { %p627_p3 = scmp.ne.s32.totalorder %s773_s5, %s626_s8  ;;  %p630_p4 = scmp.lt.u32.totalorder %s626_s8, %s773_s5 }
 0x249   :  { %p632_p5 = pnand %p630_p4, %p627_p3 }
 0x24b   :  { %635 = shalt.err (!%p632_p5)
}
 0x24c   :  { %374 = dma.vmem_to_hbm [thread:$0]  %s369_s3, 256, %s773_s5, [#allocation5], %s649_s18, %s649_s18, %s650_s19  }
 0x24d   :  { %642 = dma.done.wait [#allocation5], 256  }
 0x24e   :  { %643 = vsyncadd [#allocation5], 4294967040 }
 0x24f   :  { %378 = vsyncpa [#allocation4], 1 }
 0x250   :  { %379 = vsyncpa [#allocation7], 1 }
 0x251   :  { %380 = vsyncpa [#allocation10], 1 }
 0x252   :  { %381 = vsyncpa [#allocation5], 1 }

</bundles_post_ra>
